<compile_context>
chip_gen: v7x
topology: tpu7x:2x2x1
jax: 0.10.0
libtpu: 0.0.40
codegen_flags: <defaults>
</compile_context>

<pallas_src>
import jax
import jax.numpy as jnp
from jax.experimental import pallas as pl
from jax.experimental.pallas import tpu as pltpu

C_PAD = 128  # class axis padded to one full lane width


def _logistic_kernel(x_ref, w_ref, b_ref, o_ref):
    # x_ref: [TILE_B, D_pad] f32 (streamed)
    # w_ref: [D_pad, 128]    bf16 (resident, zero-padded classes/dim)
    # b_ref: [1, 128]        f32  (padded classes = -1e30)
    # o_ref: [TILE_B, 128]   f32
    x_bf16 = x_ref[...].astype(jnp.bfloat16)            # VPU cast, hidden under DMA
    logits = jnp.dot(x_bf16, w_ref[...],
                     preferred_element_type=jnp.float32)  # MXU, f32 accumulate
    logits = logits + b_ref[...]                          # f32 bias (padded = -1e30)
    # numerically stable softmax over the class axis (== F.softmax(x) on 2-D)
    m = jnp.max(logits, axis=-1, keepdims=True)
    e = jnp.exp(logits - m)                                # padded classes -> exp == 0
    denom = jnp.sum(e, axis=-1, keepdims=True)
    o_ref[...] = e / denom                                 # exact normalization (HBM-bound => free)


def init_logistic_params(weight, bias):
    """One-time parameter prep (model init, NOT per forward call).

    weight: [n_class, dim] (PyTorch nn.Linear convention)
    bias:   [n_class]
    Returns (w_t, b2d, n_class):
      w_t : [dim_pad, 128] bf16  -- transposed; dim zero-padded to a 128-multiple,
                                    class axis zero-padded to 128 lanes
      b2d : [1, 128]       f32   -- padded classes set to -1e30 so softmax ignores them
    """
    weight = jnp.asarray(weight, dtype=jnp.float32)
    bias = jnp.asarray(bias, dtype=jnp.float32)
    n_class, dim = weight.shape
    dim_pad = ((dim + 127) // 128) * 128
    w_t = jnp.pad(weight.T, ((0, dim_pad - dim), (0, C_PAD - n_class)))
    b2d = jnp.pad(bias, (0, C_PAD - n_class),
                  constant_values=-1e30).reshape(1, C_PAD)
    return w_t.astype(jnp.bfloat16), b2d, n_class


def logistic_model_forward(x, w_t, b2d, n_class, *, max_tile_b=2048):
    """
    x:   [B, ...] f32 (flattened like torch .view; NOT pre-cast -- streamed as f32)
    w_t: [dim_pad, 128] bf16, b2d: [1, 128] f32 (from init_logistic_params)
    returns [B, n_class] softmax probabilities, float32
    """
    B = x.shape[0]
    x2d = x.reshape(B, -1)                    # free metadata reshape, stays f32
    dim = x2d.shape[1]
    dim_pad, c_pad = w_t.shape
    if dim != dim_pad:
        # TODO(synk): this pad costs one extra HBM pass over x; only taken when
        # dim % 128 != 0 (e.g. MNIST's 784). Not hit in the demo (dim=256).
        x2d = jnp.pad(x2d, ((0, 0), (0, dim_pad - dim)))

    # --- batch tile sizing against an explicit VMEM budget -------------------
    # 40 MiB of explicit buffers fits v7x (64 MiB/TC, grid sharded over 2 TCs
    # via "parallel") and v5e/v6e (128 MiB physical) once the scoped limit is
    # raised below. v6e could go higher still; 40 MiB already allows >=2048-row
    # tiles for typical dims.
    vmem_budget = 40 * 1024 * 1024
    fixed = 2 * dim_pad * c_pad * 2 + 2 * c_pad * 4        # double-buffered weight + bias
    per_row = 2 * dim_pad * 4 + 2 * c_pad * 4              # double-buffered f32 x + f32 out
    tile_b = max(8, min(max_tile_b, (vmem_budget - fixed) // per_row))
    tile_b = (tile_b // 8) * 8                              # (8,128) sublane constraint
    if tile_b >= B:
        tile_b = B                                          # full-extent block is always legal
    grid_b = pl.cdiv(B, tile_b)                             # partial last tile handled by Pallas

    cost = pl.CostEstimate(
        flops=2 * B * dim_pad * c_pad,
        transcendentals=B * c_pad,
        bytes_accessed=B * dim_pad * 4 + dim_pad * c_pad * 2
                       + c_pad * 4 + B * c_pad * 4,
    )

    out_padded = pl.pallas_call(
        _logistic_kernel,
        out_shape=jax.ShapeDtypeStruct((B, c_pad), jnp.float32),
        grid=(grid_b,),
        in_specs=[
            pl.BlockSpec((tile_b, dim_pad), lambda i: (i, 0)),   # streamed f32 x tiles
            pl.BlockSpec((dim_pad, c_pad), lambda i: (0, 0)),    # resident bf16 weight
            pl.BlockSpec((1, c_pad), lambda i: (0, 0)),          # resident f32 bias
        ],
        out_specs=pl.BlockSpec((tile_b, c_pad), lambda i: (i, 0)),
        compiler_params=pltpu.CompilerParams(
            dimension_semantics=("parallel",),                   # megacore sharding on v7x
            vmem_limit_bytes=vmem_budget + 8 * 1024 * 1024,      # budget + compiler headroom
        ),
        cost_estimate=cost,
    )(x2d, w_t, b2d)

    return out_padded[:, :n_class]   # tiny slice (B x 128 -> B x n_class)


if __name__ == "__main__":
    key = jax.random.PRNGKey(0)
    kx, kw, kb = jax.random.split(key, 3)

    # small shapes consistent with the module: image-like input, 10 classes
    B, C, H, W = 64, 1, 16, 16
    dim = C * H * W          # 256 (already a multiple of 128 -> no x padding)
    n_class = 10

    x = jax.random.normal(kx, (B, C, H, W), dtype=jnp.float32)
    # deterministic nn.Linear-like init: uniform(-1/sqrt(dim), 1/sqrt(dim))
    bound = 1.0 / jnp.sqrt(jnp.float32(dim))
    weight = jax.random.uniform(kw, (n_class, dim), minval=-bound, maxval=bound,
                                dtype=jnp.float32)
    bias = jax.random.uniform(kb, (n_class,), minval=-bound, maxval=bound,
                              dtype=jnp.float32)

    # one-time param prep (lives at model init in production)
    w_t, b2d, nc = init_logistic_params(weight, bias)

    # small max_tile_b so the demo exercises the pipelined batch grid (grid=(4,))
    out = logistic_model_forward(x, w_t, b2d, nc, max_tile_b=16)
    out = jax.block_until_ready(out)

    # sanity check against pure-JAX f32 reference (bf16 matmul -> loose atol)
    ref = jax.nn.softmax(x.reshape(B, -1) @ weight.T + bias, axis=-1)
    assert out.shape == (B, n_class)
    assert jnp.allclose(out, ref, atol=2e-2, rtol=2e-2)
    assert jnp.allclose(jnp.sum(out, axis=-1), 1.0, atol=1e-3)

    print("KERNEL_OK")
</pallas_src>

<mosaic_0001>
module attributes {stable_mosaic.version = 11 : i64} {
  func.func @_logistic_kernel(%arg0: i32, %arg1: memref<16x256xf32, #tpu.memory_space<vmem>>, %arg2: memref<256x128xbf16, #tpu.memory_space<vmem>>, %arg3: memref<1x128xf32, #tpu.memory_space<vmem>>, %arg4: memref<16x128xf32, #tpu.memory_space<vmem>>) attributes {dimension_semantics = [#tpu.dimension_semantics<parallel>], iteration_bounds = array<i64: 4>, scalar_prefetch = 0 : i64, scratch_operands = 0 : i64, tpu.core_type = #tpu.core_type<tc>, window_params = [{transform_indices = @transform_0, window_bounds = array<i64: 16, 256>}, {pipeline_mode = #tpu.pipeline_mode<synchronous>, transform_indices = @transform_1, window_bounds = array<i64: 256, 128>}, {pipeline_mode = #tpu.pipeline_mode<synchronous>, transform_indices = @transform_2, window_bounds = array<i64: 1, 128>}, {transform_indices = @transform_3, window_bounds = array<i64: 16, 128>}]} {
    %c0 = arith.constant 0 : index
    %c0_0 = arith.constant 0 : index
    %0 = vector.load %arg1[%c0, %c0_0] : memref<16x256xf32, #tpu.memory_space<vmem>>, vector<16x256xf32>
    %1 = arith.truncf %0 : vector<16x256xf32> to vector<16x256xbf16>
    %c0_1 = arith.constant 0 : index
    %c0_2 = arith.constant 0 : index
    %2 = vector.load %arg2[%c0_1, %c0_2] : memref<256x128xbf16, #tpu.memory_space<vmem>>, vector<256x128xbf16>
    %cst = arith.constant dense<0.000000e+00> : vector<16x128xf32>
    %3 = tpu.matmul %1, %2, %cst {dimension_numbers = #tpu.dot_dimension_numbers<[1], [0], [0], [1], [0, 0, 1, 1], [], []>} : vector<16x256xbf16>, vector<256x128xbf16>, vector<16x128xf32> -> vector<16x128xf32>
    %c0_3 = arith.constant 0 : index
    %c0_4 = arith.constant 0 : index
    %4 = vector.load %arg3[%c0_3, %c0_4] : memref<1x128xf32, #tpu.memory_space<vmem>>, vector<1x128xf32>
    %5 = vector.broadcast %4 : vector<1x128xf32> to vector<16x128xf32>
    %6 = arith.addf %3, %5 : vector<16x128xf32>
    %cst_5 = arith.constant dense<0xFF800000> : vector<16xf32>
    %7 = vector.multi_reduction <maximumf>, %6, %cst_5 [1] : vector<16x128xf32> to vector<16xf32>
    %8 = vector.shape_cast %7 : vector<16xf32> to vector<16x1xf32>
    %9 = vector.broadcast %8 : vector<16x1xf32> to vector<16x128xf32>
    %10 = arith.subf %6, %9 : vector<16x128xf32>
    %11 = math.exp %10 : vector<16x128xf32>
    %cst_6 = arith.constant dense<0.000000e+00> : vector<16xf32>
    %12 = vector.multi_reduction <add>, %11, %cst_6 [1] : vector<16x128xf32> to vector<16xf32>
    %13 = vector.shape_cast %12 : vector<16xf32> to vector<16x1xf32>
    %14 = vector.broadcast %13 : vector<16x1xf32> to vector<16x128xf32>
    %15 = arith.divf %11, %14 : vector<16x128xf32>
    %c0_7 = arith.constant 0 : index
    %c0_8 = arith.constant 0 : index
    %16 = vector.load %arg4[%c0_7, %c0_8] : memref<16x128xf32, #tpu.memory_space<vmem>>, vector<16x128xf32>
    tpu.vector_store %arg4[%c0_7, %c0_8], %15 {strides = array<i32>} : memref<16x128xf32, #tpu.memory_space<vmem>>, vector<16x128xf32>,
    return
  }
  func.func @transform_0(%arg0: i32) -> (i32, i32) {
    %c0_i32 = arith.constant 0 : i32
    %c0_i32_0 = arith.constant 0 : i32
    return %arg0, %c0_i32 : i32, i32
  }
  func.func @transform_1(%arg0: i32) -> (i32, i32) {
    %c0_i32 = arith.constant 0 : i32
    %c0_i32_0 = arith.constant 0 : i32
    %c0_i32_1 = arith.constant 0 : i32
    return %c0_i32, %c0_i32_0 : i32, i32
  }
  func.func @transform_2(%arg0: i32) -> (i32, i32) {
    %c0_i32 = arith.constant 0 : i32
    %c0_i32_0 = arith.constant 0 : i32
    %c0_i32_1 = arith.constant 0 : i32
    return %c0_i32, %c0_i32_0 : i32, i32
  }
  func.func @transform_3(%arg0: i32) -> (i32, i32) {
    %c0_i32 = arith.constant 0 : i32
    %c0_i32_0 = arith.constant 0 : i32
    return %arg0, %c0_i32 : i32, i32
  }
}

</mosaic_0001>

<bundles_post_ra>
// kernel: tpu_custom_call.1
= control target key start
LH: loop header
LB: loop body
LE: loop exit
PB: predicated region body
PF: predicated region fallthrough
CT: control target
= control target key end

     0   :  { %8 = vsyncpa [#allocation3], 0  ;;  %s1014_s0 = inlined_call_operand.hbm [shape: f32[64,256], index: 0, kind: input, shape index: {}]   ;;  %s1015_s1 = inlined_call_operand.hbm [shape: bf16[256,128], index: 1, kind: input, shape index: {}]   ;;  %s1016_s2 = inlined_call_operand.vmem [shape: f32[1,128], index: 2, kind: input, shape index: {}]   ;;  %s1017_s3 = inlined_call_operand.hbm [shape: f32[64,128], index: 3, kind: output, shape index: {}]  }
   0x1   :  { %10 = vsyncpa [#allocation3 + $0x1], 0 }
   0x2   :  { %11 = vsyncpa [#allocation6], 0 }
   0x3   :  { %12 = vsyncpa [#allocation4], 0 }
   0x4   :  { %14 = vsyncpa [#allocation4 + $0x1], 0  ;;  %s812_s12 = smov 0   ;;  %s814_s13 = smov 0  }
   0x5   :  { %s816_s14 = smov 0   ;;  %s818_s15 = smov 0  }
   0x6 LB: > { %s833_s16 = sadd.s32 4294967295, %s781_s15   ;;  %s507_s17 = sadd.s32 4294967294, %s781_s15   ;;  %s781_s15 = sphi %s818_s15, %s1036_s15   ;;  %s777_s14 = sphi %s816_s14, %s1035_s14   ;;  %s773_s13 = sphi %s814_s13, %s1034_s13   ;;  %s769_s12 = sphi %s812_s12, %s1033_s12  }
   0x7   : > { %p40_p0 = scmp.ne.s32.totalorder %s773_s13, %s769_s12  ;;  %p1018_p1 = scmp.eq.s32.totalorder %s833_s16, 0 }
   0x8   : > { %p112_p3 = scmp.eq.s32.totalorder %s507_s17, 3  ;;  %p508_p5 = scmp.ge.s32.totalorder %s781_s15, 1 }
   0x9   : > { %p842_p4 = por %p1018_p1, %p40_p0  ;;  %p119_p7 = scmp.lt.s32.totalorder %s781_s15, 5 }
   0xa   : > { %p847_p6 = por %p112_p3, %p40_p0  ;;  %s783_s21 = smov [#allocation5]  }
   0xb   : > { %s1021_s18 = scalar_select %p842_p4, 1, 0 }
   0xc   : > { %s1022_s19 = scalar_select %p847_p6, 1, 0 }
   0xd   : > { %p852_p8 = pnand %p508_p5, %p119_p7  ;;  %s131_s22 = sshll.u32 %s783_s21, 4  ;;  %s132_s22 = int_to_ptr.vmem [resolvable:$true] %s131_s22 }
   0xe   : > { %s865_s24 = sadd.s32 1, %s781_s15   ;;  %s27_s25 = sadd.s32 1, %s777_s14 }
   0xf   : > { %s1023_s20 = scalar_select %p852_p8, 1, 0 }
  0x10   : > { %p574_p9 = pneg %p852_p8  ;;  %s24_s26 = ssub.s32 %s781_s15, %s865_s24 }
  0x11   : > { %s653_s29 = scalar_lea.hbm %s1015_s1, 2048 }
  0x12   : > { %p860_p10 = pnand %p574_p9, %p1018_p1  ;;  %p654_p11 = scmp.ne.s32.totalorder %s1015_s1, %s653_s29 }
  0x13   : > { %p660_p3 = scmp.lt.u32.totalorder %s653_s29, %s1015_s1 }
  0x14   : > { %p655_p12 = pneg %p860_p10 }
  0x16   : > { %p656_p13 = pnand %p655_p12, %p654_p11 }
  0x18   : > { %p657_p0 = pneg %p656_p13 }
  0x1a   : > { %p662_p5 = pnand %p660_p3, %p657_p0 }
  0x1c   : > { %665 = shalt.err (!%p662_p5)
}
  0x1d   : > { %s666_s7 = scalar_lea.vmem %s132_s22, 2048  ;;  %p674_p2 = scmp.lt.s32.totalorder %s132_s22, %s132_s22 }
  0x1e   : > { %p667_p7 = scmp.ne.s32.totalorder %s132_s22, %s666_s7  ;;  %p675_p6 = scmp.lt.s32.totalorder %s666_s7, %s666_s7 }
  0x20   : > { %p669_p9 = pnand %p667_p7, %p655_p12  ;;  %p676_p4 = por %p675_p6, %p674_p2 }
  0x22   : > { %p670_p1 = pneg %p669_p9 }
  0x24   : > { %p677_p8 = pnand %p676_p4, %p670_p1 }
  0x26   : > { %680 = shalt.err (!%p677_p8)
}
  0x27   : > { %s784_s8 = smov 64   ;;  %s785_s9 = smov 4  }
  0x28   : > { %577 = dma.hbm_to_vmem [thread:$0]  (!%p860_p10), %s1015_s1, 2048, %s132_s22, [#allocation6], %s784_s8, %s784_s8, %s785_s9  }
  0x29   : > { %p25_p11 = scmp.eq.s32.totalorder %s24_s26, 0  ;;  %p34_p2 = scmp.ne.s32.totalorder %s777_s14, %s773_s13 }
  0x2a   : > { %p35_p1 = scmp.eq.s32.totalorder %s781_s15, 0  ;;  %p587_p4 = scmp.lt.s32.totalorder %s781_s15, 4 }
  0x2b   : > { %s891_s17 = scalar_select %p25_p11, %s777_s14, %s27_s25  }
  0x2c   : > { %p36_p6 = por %p35_p1, %p34_p2  ;;  %p1025_p8 = scmp.eq.s32.totalorder %s833_s16, 3 }
  0x2d   : > { %s148_s27 = sand.u32 1, %s777_s14   ;;  %s542_s28 = sshll.u32 %s781_s15, 9 }
  0x2e   : > { %p895_p12 = por %p1025_p8, %p34_p2  ;;  %s511_s29 = sshll.u32 %s148_s27, 5 }
  0x2f   : > { %s904_s4 = scalar_lea.hbm %s1014_s0, %s542_s28  ;;  %s152_s22 = scalar_lea.vmem [#allocation2], %s511_s29 }
  0x30   : > { %s160_s25 = sshll.u32 %s152_s22, 4  ;;  %p906_p10 = pnand %p587_p4, %p36_p6  ;;  %s910_s25 = int_to_ptr.vmem [resolvable:$true] %s160_s25 }
  0x31   : > { %s912_s5 = scalar_lea.sflag [#allocation3], %s148_s27  ;;  %s681_s6 = scalar_lea.hbm %s904_s4, 512 }
  0x32   : > { %p682_p13 = scmp.ne.s32.totalorder %s904_s4, %s681_s6  ;;  %p683_p0 = pneg %p906_p10 }
  0x33   : > { %s686_s9 = scalar_lea.hbm %s1014_s0, 2048  ;;  %p687_p7 = scmp.lt.u32.totalorder %s904_s4, %s1014_s0 }
  0x34   : > { %p684_p3 = pnand %p683_p0, %p682_p13  ;;  %p688_p9 = scmp.lt.u32.totalorder %s686_s9, %s681_s6 }
  0x35   : > { %p690_p2 = scmp.lt.u32.totalorder %s681_s6, %s904_s4 }
  0x36   : > { %p685_p5 = pneg %p684_p3  ;;  %p689_p11 = por %p688_p9, %p687_p7 }
  0x38   : > { %p691_p1 = por %p690_p2, %p689_p11 }
  0x3a   : > { %p692_p4 = pnand %p691_p1, %p685_p5 }
  0x3c   : > { %695 = shalt.err (!%p692_p4)
}
  0x3d   : > { %s696_s27 = scalar_lea.vmem %s910_s25, 512  ;;  %s786_s28 = smov [#allocation2]  }
  0x3e   : > { %p697_p6 = scmp.ne.s32.totalorder %s910_s25, %s696_s27  ;;  %s701_s29 = sshll.u32 %s786_s28, 4  ;;  %s702_s29 = int_to_ptr.vmem [resolvable:$false] %s701_s29 }
  0x3f   : > { %s703_s23 = scalar_lea.vmem %s702_s29, 1024  ;;  %p704_p3 = scmp.lt.s32.totalorder %s910_s25, %s702_s29 }
  0x40   : > { %p699_p8 = pnand %p697_p6, %p683_p0  ;;  %p705_p7 = scmp.lt.s32.totalorder %s703_s23, %s696_s27 }
  0x42   : > { %p700_p13 = pneg %p699_p8  ;;  %p706_p9 = por %p705_p7, %p704_p3 }
  0x44   : > { %p707_p11 = pnand %p706_p9, %p700_p13 }
  0x46   : > { %710 = shalt.err (!%p707_p11)
}
  0x47   : > { %s787_s30 = smov 256   ;;  %s788_s22 = smov 16  }
  0x48   : > { %581 = dma.hbm_to_vmem [thread:$0]  (!%p906_p10), %s904_s4, 512, %s910_s25, %s912_s5, %s787_s30, %s787_s30, %s788_s22  }
  0x49   : > { %p1028_p0 = scmp.ne.s32.totalorder %s1023_s20, 0 }
  0x4a   : > { %s943_s6 = sand.u32 (!%p1028_p0), 1, %s773_s13   ;;  %p1029_p5 = scmp.ne.s32.totalorder (!%p1028_p0), %s1021_s18, 0 }
  0x4b   : > { %172 = sbr.rel (%p1028_p0) target bundleno = 667 (0x29b), region = 32  ;;  %s516_s7 = sshll.u32 (!%p1028_p0), %s943_s6, 5 }
  0x4c   : > { %s175_s8 = scalar_lea.sflag (!%p1028_p0), [#allocation3], %s943_s6  ;;  %s947_s9 = scalar_lea.vmem (!%p1028_p0), [#allocation2], %s516_s7 }
  0x52   : > { %756 = dma.done.wait (%p1029_p5), %s175_s8, 512  }
  0x53   : > { %758 = vsyncadd (%p1029_p5), %s175_s8, 4294966784  ;;  %p1030_p10 = scmp.eq.s32.totalorder %s833_s16, 0 }
  0x55   : > { %760 = dma.done.wait (%p1030_p10), [#allocation6], 2048   ;;  %p1031_p2 = pmov %p1030_p10 }
  0x56   : > { %v629_v0 = vld [vmem:[#allocation5 + $0x40] sm:$0xff]   ;;  %v631_v2 = vld [vmem:[#allocation5 + $0x48] sm:$0xff]   ;;  %v633_v4 = vld [vmem:[#allocation5 + $0x50] sm:$0xff]   ;;  %s518_s4 = sshll.u32 %s943_s6, 4  ;;  %s543_s25 = sshll.u32 %s833_s16, 8 }
  0x57   : > { %762 = vsyncadd (%p1031_p2), [#allocation6], 4294965248  ;;  %v630_v1 = vld [vmem:[#allocation5] sm:$0xff]   ;;  %544 = vmatprep.subr.bf16.mxu0 %v629_v0  ;;  %v632_v3 = vld [vmem:[#allocation5 + $0x8] sm:$0xff]   ;;  %s204_s26 = scalar_lea.vmem [#allocation7], %s518_s4  ;;  %s969_s27 = scalar_lea.hbm %s1017_s3, %s543_s25 }
  0x58   : > { %545 = vmatpush3.bf16.msra.mxu0 %v630_v1  ;;  %v634_v5 = vld [vmem:[#allocation5 + $0x10] sm:$0xff]   ;;  %v635_v6 = vld [vmem:[#allocation5 + $0x58] sm:$0xff]   ;;  %v637_v8 = vld [vmem:[#allocation5 + $0x60] sm:$0xff]   ;;  %s424_s5 = sshll.u32 %s204_s26, 4  ;;  %s411_s28 = scalar_lea.sflag [#allocation4], %s943_s6  ;;  %s971_s5 = int_to_ptr.vmem [resolvable:$true] %s424_s5 }
  0x59   : > { %546 = vmatprep.subr.bf16.mxu0 %v631_v2  ;;  %v636_v7 = vld [vmem:[#allocation5 + $0x18] sm:$0xff]   ;;  %v638_v9 = vld [vmem:[#allocation5 + $0x20] sm:$0xff]   ;;  %v639_v10 = vld [vmem:[#allocation5 + $0x68] sm:$0xff]   ;;  %s711_s29 = scalar_lea.vmem %s971_s5, 256  ;;  %s789_s16 = smov [#allocation7]  }
  0x5a   : > { %v209_v11 = vld [vmem:[%s947_s9 + $0x8] sm:$0xff]  ;;  %v211_v12 = vld [vmem:[%s947_s9 + $0x18] sm:$0xff]  ;;  %v641_v15 = vld [vmem:[#allocation5 + $0x70] sm:$0xff]   ;;  %p712_p1 = scmp.ne.s32.totalorder %s971_s5, %s711_s29  ;;  %s715_s23 = sshll.u32 %s789_s16, 4  ;;  %s716_s23 = int_to_ptr.vmem [resolvable:$false] %s715_s23 }
  0x5b   : > { %v213_v13 = vpack.c.bf16 %v211_v12, %v209_v11  ;;  %v640_v14 = vld [vmem:[#allocation5 + $0x28] sm:$0xff]   ;;  %v642_v16 = vld [vmem:[#allocation5 + $0x30] sm:$0xff]   ;;  %v643_v17 = vld [vmem:[#allocation5 + $0x78] sm:$0xff]   ;;  %s717_s30 = scalar_lea.vmem %s716_s23, 512  ;;  %p718_p8 = scmp.lt.s32.totalorder %s971_s5, %s716_s23 }
  0x5c   : > { %547 = vmatpush3.bf16.msra.mxu0 %v632_v3  ;;  %v644_v18 = vld [vmem:[#allocation5 + $0x38] sm:$0xff]   ;;  %v208_v19 = vld [vmem:[%s947_s9] sm:$0xff]  ;;  %v210_v20 = vld [vmem:[%s947_s9 + $0x10] sm:$0xff]  ;;  %p713_p4 = pnand %p712_p1, %p895_p12  ;;  %p719_p13 = scmp.lt.s32.totalorder %s717_s30, %s711_s29 }
  0x5d   : > { %548 = vmatprep.subr.bf16.mxu0 %v633_v4  ;;  %381 = vmatprep.mubr.bf16.mxu0 %v213_v13  ;;  %v212_v21 = vpack.c.bf16 %v210_v20, %v208_v19  ;;  %v519_v24 = vld [vmem:[%s1016_s2] ss:$0 sm:$0xff] }
  0x5e   : > { %p714_p6 = pneg %p713_p4  ;;  %p720_p3 = por %p719_p13, %p718_p8 }
  0x60   : > { %549 = vmatpush3.bf16.msra.mxu0 %v634_v5  ;;  %p721_p7 = pnand %p720_p3, %p714_p6 }
  0x61   : > { %550 = vmatprep.subr.bf16.mxu0 %v635_v6 }
  0x64   : > { %551 = vmatpush3.bf16.msra.mxu0 %v636_v7 }
  0x65   : > { %552 = vmatprep.subr.bf16.mxu0 %v637_v8 }
  0x68   : > { %553 = vmatpush3.bf16.msra.mxu0 %v638_v9 }
  0x69   : > { %554 = vmatprep.subr.bf16.mxu0 %v639_v10 }
  0x6c   : > { %555 = vmatpush3.bf16.msra.mxu0 %v640_v14 }
  0x6d   : > { %556 = vmatprep.subr.bf16.mxu0 %v641_v15 }
  0x70   : > { %557 = vmatpush3.bf16.msra.mxu0 %v642_v16 }
  0x71   : > { %558 = vmatprep.subr.bf16.mxu0 %v643_v17 }
  0x74   : > { %559 = vmatpush3.bf16.msra.mxu0 %v644_v18 }
  0x77   : > { %382 = vmatmul.mubr.bf16.vlgmr.msra.gmra.mrb[0].mxu0 %v212_v21 }
 0x14a   : > { %v560_v22 = vpop.f32.mrb[0].mxu0 }
 0x14b   : > { %v561_v23 = vpop.f32.mrb[1].mxu0 }
 0x14c   : > { %v562_v25 = vadd.f32 %v561_v23, %v560_v22  ;;  %v563_v26 = vpop.f32.mrb[2].mxu0 }
 0x14d   : > { %v564_v27 = vpop.f32.mrb[3].mxu0 }
 0x14e   : > { %v565_v28 = vadd.f32 %v564_v27, %v563_v26  ;;  %v384_v29 = vadd.f32 %v562_v25, %v519_v24 }
 0x150   : > { %390 = vmax.xlane.f32.xlu0 %v384_v29  ;;  %v387_v30 = vadd.f32 %v565_v28, %v519_v24 }
 0x154   : > { %392 = vmax.xlane.f32.xlu0 %v387_v30 }
 0x1dd   : > { %v391_v31 = vpop.xlane.xlu0 %390 }
 0x1de   : > { %v394_v32 = vsub.f32 %v384_v29, %v391_v31 }
 0x1e0   : > { %v396_v33 = vmul.f32 1.442695, %v394_v32 }
 0x1e1   : > { %v393_v34 = vpop.xlane.xlu0 %392 }
 0x1e2   : > { %645 = vpow2.f32 %v396_v33  ;;  %v395_v35 = vsub.f32 %v387_v30, %v393_v34 }
 0x1e4   : > { %v398_v36 = vmul.f32 1.442695, %v395_v35 }
 0x1e6   : > { %647 = vpow2.f32 %v398_v36 }
 0x1ec   : > { %v646_v37 = vpop.eup %645 }
 0x1ed   : > { %400 = vadd.xlane.f32.xlu1 %v646_v37 }
 0x1f0   : > { %v648_v38 = vpop.eup %647 }
 0x1f1   : > { %402 = vadd.xlane.f32.xlu1 %v648_v38 }
 0x27a   : > { %v401_v39 = vpop.xlane.xlu1 %400 }
 0x27b   : > { %649 = vrcp.f32 %v401_v39 }
 0x27e   : > { %v403_v40 = vpop.xlane.xlu1 %402 }
 0x27f   : > { %651 = vrcp.f32 %v403_v40 }
 0x285   : > { %v650_v41 = vpop.eup %649 }
 0x286   : > { %v405_v42 = vmul.f32 %v650_v41, %v646_v37 }
 0x288   : > { %408 = vst [vmem:[%s204_s26] sm:$0xff] %v405_v42 }
 0x289   : > { %v652_v43 = vpop.eup %651 }
 0x28a   : > { %v407_v44 = vmul.f32 %v652_v43, %v648_v38 }
 0x28c   : > { %409 = vst [vmem:[%s204_s26 + $0x8] sm:$0xff] %v407_v44 }
 0x28d   : > { %724 = shalt.err (!%p721_p7)
}
 0x28e   : > { %s725_s22 = scalar_lea.hbm %s969_s27, 256  ;;  %s729_s9 = scalar_lea.hbm %s1017_s3, 1024 }
 0x28f   : > { %p726_p9 = scmp.ne.s32.totalorder %s969_s27, %s725_s22  ;;  %p730_p5 = scmp.lt.u32.totalorder %s969_s27, %s1017_s3 }
 0x290   : > { %p731_p10 = scmp.lt.u32.totalorder %s729_s9, %s725_s22  ;;  %p733_p1 = scmp.lt.u32.totalorder %s725_s22, %s969_s27 }
 0x291   : > { %p727_p11 = pnand %p726_p9, %p895_p12 }
 0x292   : > { %p732_p2 = por %p731_p10, %p730_p5 }
 0x293   : > { %p728_p0 = pneg %p727_p11 }
 0x294   : > { %p734_p4 = por %p733_p1, %p732_p2 }
 0x296   : > { %p735_p6 = pnand %p734_p4, %p728_p0 }
 0x298   : > { %738 = shalt.err (!%p735_p6)
}
 0x299   : > { %s790_s4 = smov 128   ;;  %s791_s25 = smov 8  }
 0x29a   : > { %572 = dma.vmem_to_hbm [thread:$0]  (%p895_p12), %s971_s5, 256, %s969_s27, %s411_s28, %s790_s4, %s790_s4, %s791_s25  }
 0x29b PF: > { %p589_p8 = scmp.ge.s32.totalorder %s781_s15, 2  ;;  %s439_s26 = sand.u32 1, %s769_s12  }
 0x29c   : > { %p1032_p13 = scmp.ne.s32.totalorder %s1022_s19, 0  ;;  %s440_s10 = scalar_lea.sflag [#allocation4], %s439_s26 }
 0x29e   : > { %p583_p3 = pnand %p589_p8, %p1032_p13 }
 0x2a0   : > { %764 = dma.done.wait (!%p583_p3), %s440_s10, 256  }
 0x2a1   : > { %766 = vsyncadd (!%p583_p3), %s440_s10, 4294967040  ;;  %p17_p7 = scmp.ge.s32.totalorder %s865_s24, 6   ;;  %s1033_s12 = smov %s773_s13 }
 0x2a2   : > { %s1034_s13 = smov %s777_s14  ;;  %s1035_s14 = smov %s891_s17 }
 0x2a3   : > { %s1036_s15 = smov %s865_s24  ;;  %19 = sbr.rel (!%p17_p7) target bundleno = 6 (0x6), region = 81 }
 0x2aa   :  { %445 = vsyncpa [#allocation3], 1 }
 0x2ab   :  { %447 = vsyncpa [#allocation3 + $0x1], 1 }
 0x2ac   :  { %448 = vsyncpa [#allocation6], 1 }
 0x2ad   :  { %449 = vsyncpa [#allocation4], 1 }
 0x2ae   :  { %451 = vsyncpa [#allocation4 + $0x1], 1 }

</bundles_post_ra>
